<compile_context>
chip_gen: v7x
topology: tpu7x:2x2x1
jax: 0.10.0
libtpu: 0.0.40
codegen_flags: <defaults>
</compile_context>

<pallas_src>
import jax
import jax.numpy as jnp
from jax.experimental import pallas as pl
from jax.experimental.pallas import tpu as pltpu

_LANE = 128
_NEG_BIG = -1e30  # padded-class bias -> exp() underflows to 0 in log_softmax


def _round_up(x, m):
    return ((x + m - 1) // m) * m


def _vmem_capacity_bytes():
    try:
        return int(pltpu.get_tpu_info().vmem_capacity_bytes)
    except Exception:
        return 64 * 1024 * 1024  # conservative: v7x per-TensorCore VMEM


# ---------------- fused Pallas kernel ----------------

def _make_mlp_kernel(num_layers, h_cols, c_cols):
    """Ref order: x, w_0..w_{L-1}, shift_0..shift_{L-2}, b_last, logp_out, hidden_out."""
    n_w = num_layers
    n_s = num_layers - 1

    def kernel(*refs):
        x_ref = refs[0]
        w_refs = refs[1:1 + n_w]
        shift_refs = refs[1 + n_w:1 + n_w + n_s]
        b_last_ref = refs[1 + n_w + n_s]
        logp_ref = refs[2 + n_w + n_s]
        hidden_ref = refs[3 + n_w + n_s]

        # Hidden layers: (Linear + folded BN) -> ReLU. bf16 MXU operands, f32 acc.
        h_mm = x_ref[...].astype(jnp.bfloat16)
        for li in range(num_layers - 1):
            z = jnp.dot(h_mm, w_refs[li][...],
                        preferred_element_type=jnp.float32)
            z = z + shift_refs[li][...]            # folded Linear bias + BN shift
            h_mm = jnp.maximum(z, 0.0).astype(jnp.bfloat16)
        # Dropout: no-op in eval mode.

        # Last hidden, bf16, only the real H columns.
        hidden_ref[...] = h_mm[:, :h_cols].astype(hidden_ref.dtype)

        # Final Linear + numerically-stable log_softmax (f32).
        logits = jnp.dot(h_mm, w_refs[-1][...],
                         preferred_element_type=jnp.float32)
        logits = logits + b_last_ref[...]          # padded classes get -1e30
        m = jnp.max(logits, axis=-1, keepdims=True)
        shifted = logits - m
        lse = jnp.log(jnp.sum(jnp.exp(shifted), axis=-1, keepdims=True))
        logp_ref[...] = (shifted - lse)[:, :c_cols].astype(logp_ref.dtype)

    return kernel


# ---------------- parameter folding / padding (one-time, plain JAX) ----------------

def fold_and_pad_params(params, eps=1e-5):
    """Fold BN(eval) + Linear bias into (weight, shift); lane-pad K/H/C to 128;
    cast matmul weights to bf16."""
    lins = params["lins"]
    bns = params["bns"]
    L = len(lins)
    assert L >= 2
    K = lins[0][0].shape[0]
    H = lins[0][0].shape[1]
    C = lins[-1][0].shape[1]
    Kp = _round_up(K, _LANE)
    Hp = _round_up(H, _LANE)
    Cp = _round_up(C, _LANE)

    ws, shifts = [], []
    for li in range(L - 1):
        w, b = lins[li]
        gamma, beta, mean, var = bns[li]
        bn_scale = gamma / jnp.sqrt(var + eps)
        w_folded = w * bn_scale[None, :]                 # fold BN scale into W
        shift = (b - mean) * bn_scale + beta             # fold bias + BN shift
        in_dim = w.shape[0]
        in_p = Kp if li == 0 else Hp
        w_pad = jnp.zeros((in_p, Hp), jnp.float32).at[:in_dim, :H].set(w_folded)
        ws.append(w_pad.astype(jnp.bfloat16))
        shifts.append(jnp.zeros((1, Hp), jnp.float32).at[0, :H].set(shift))

    w_last, b_last = lins[-1]
    w_last_p = jnp.zeros((Hp, Cp), jnp.float32).at[:H, :C].set(w_last)
    b_last_p = jnp.full((1, Cp), _NEG_BIG, jnp.float32).at[0, :C].set(b_last)

    return {"ws": ws, "shifts": shifts,
            "w_last": w_last_p.astype(jnp.bfloat16), "b_last": b_last_p,
            "dims": (K, Kp, H, Hp, C, Cp, L)}


# ---------------- wrapper ----------------

def _build_and_run(kernel, x_in, all_ws, shifts, b_last, tile_n, grid, N, H, C,
                   vmem_limit, cost, single_buffer_consts):
    row = lambda i: (i, 0)       # row-tiled operands
    const = lambda i: (0, 0)     # VMEM-resident across grid steps
    const_kw = {"pipeline_mode": pl.Buffered(1)} if single_buffer_consts else {}

    in_specs = [pl.BlockSpec((tile_n, x_in.shape[1]), row)]
    in_specs += [pl.BlockSpec(w.shape, const, **const_kw) for w in all_ws]
    in_specs += [pl.BlockSpec(s.shape, const, **const_kw) for s in shifts]
    in_specs += [pl.BlockSpec(b_last.shape, const, **const_kw)]

    out_shape = (jax.ShapeDtypeStruct((N, C), jnp.float32),
                 jax.ShapeDtypeStruct((N, H), jnp.bfloat16))
    out_specs = (pl.BlockSpec((tile_n, C), row),
                 pl.BlockSpec((tile_n, H), row))

    return pl.pallas_call(
        kernel,
        out_shape=out_shape,
        grid=grid,
        in_specs=in_specs,
        out_specs=out_specs,
        compiler_params=pltpu.CompilerParams(
            dimension_semantics=("parallel",),      # shard row tiles across TCs
            vmem_limit_bytes=vmem_limit),
        cost_estimate=cost,
    )(x_in, *all_ws, *shifts, b_last)


def mlp_infer(folded, x, tile_n=1024):
    """Inference forward: returns (log_softmax(logits) [N,C] f32, last_hidden [N,H] bf16)."""
    K, Kp, H, Hp, C, Cp, L = folded["dims"]
    N = x.shape[0]

    # Input: avoid an extra wrapper pad/cast HBM pass when K is already lane-aligned.
    if Kp == K:
        x_in = x                                   # f32 straight from HBM; bf16 cast in-kernel
    else:
        x_in = jnp.zeros((N, Kp), jnp.bfloat16).at[:, :K].set(x.astype(jnp.bfloat16))
    x_cols = x_in.shape[1]
    x_isz = x_in.dtype.itemsize

    all_ws = folded["ws"] + [folded["w_last"]]
    shifts = folded["shifts"]
    b_last = folded["b_last"]
    w_bytes = sum(int(w.size) * 2 for w in all_ws)
    small_bytes = sum(int(s.size) * 4 for s in shifts) + int(b_last.size) * 4

    # Row-tile selection: >=2 grid steps when N allows (v7x has 2 TCs), multiple
    # of 16 (bf16 sublane packing), shrunk until the VMEM estimate fits budget.
    cap = _vmem_capacity_bytes()
    budget = int(cap * 0.70)
    tile_n = min(tile_n, _round_up(pl.cdiv(N, 2), 16))
    tile_n = max(16, _round_up(tile_n, 16))

    def vmem_need(t):
        n = w_bytes * 1 + 2 * small_bytes                 # weights single-buffered
        n += 2 * t * x_cols * x_isz                       # x tile (double-buffered)
        n += 2 * t * C * 4 + 2 * t * H * 2                # logp(f32) + hidden(bf16) out tiles
        n += t * (4 * Hp + 2 * max(Hp, x_cols) + 8 * Cp)  # live intermediates
        return n

    while tile_n > 16 and vmem_need(tile_n) > budget:
        tile_n = max(16, _round_up(tile_n // 2, 16))
    # TODO(synk): if resident weights alone exceed the VMEM budget (very large Hp / L),
    # stream them via memory_space=pl.ANY + pltpu.emit_pipeline instead of residency.

    grid = (pl.cdiv(N, tile_n),)
    vmem_limit = int(max(32 * 1024 * 1024, min(vmem_need(tile_n) * 1.5, cap * 0.85)))

    flops = 2 * N * (Kp * Hp + max(L - 2, 0) * Hp * Hp + Hp * Cp)
    bytes_accessed = (N * x_cols * x_isz + w_bytes + small_bytes
                      + N * C * 4 + N * H * 2)
    cost = pl.CostEstimate(flops=flops,
                           transcendentals=N * (Cp + 1),
                           bytes_accessed=bytes_accessed)

    kernel = _make_mlp_kernel(L, H, C)
    try:
        logp, hidden = _build_and_run(kernel, x_in, all_ws, shifts, b_last,
                                      tile_n, grid, N, H, C, vmem_limit, cost,
                                      single_buffer_consts=True)
    except Exception:
        # Fallback for jax versions without pipeline_mode=pl.Buffered support.
        logp, hidden = _build_and_run(kernel, x_in, all_ws, shifts, b_last,
                                      tile_n, grid, N, H, C, vmem_limit, cost,
                                      single_buffer_consts=False)
    return logp, hidden


# ---------------- pure-JAX reference (same bf16 quantization, f32 math) ----------------

def mlp_reference(folded, x):
    K, Kp, H, Hp, C, Cp, L = folded["dims"]
    xb = x.astype(jnp.bfloat16).astype(jnp.float32)
    if Kp != K:
        xb = jnp.pad(xb, ((0, 0), (0, Kp - K)))
    h_mm = xb
    hidden_bf16 = None
    for w, s in zip(folded["ws"], folded["shifts"]):
        z = h_mm @ w.astype(jnp.float32) + s
        hidden_bf16 = jnp.maximum(z, 0.0).astype(jnp.bfloat16)
        h_mm = hidden_bf16.astype(jnp.float32)
    logits = h_mm @ folded["w_last"].astype(jnp.float32) + folded["b_last"]
    logp = jax.nn.log_softmax(logits, axis=-1)
    return logp[:, :C], hidden_bf16[:, :H]


# ---------------- parameter construction (deterministic, synthetic) ----------------

def init_mlp_params(key, in_channels, hidden_channels, out_channels, num_layers):
    """Mirrors torch MLP __init__ shapes. Weights stored as [in, out]."""
    dims = [in_channels] + [hidden_channels] * (num_layers - 1) + [out_channels]
    params = {"lins": [], "bns": []}
    for li in range(num_layers):
        fan_in, fan_out = dims[li], dims[li + 1]
        key, kw, kb = jax.random.split(key, 3)
        bound = 1.0 / jnp.sqrt(fan_in)
        w = jax.random.uniform(kw, (fan_in, fan_out), jnp.float32, -bound, bound)
        b = jax.random.uniform(kb, (fan_out,), jnp.float32, -bound, bound)
        params["lins"].append((w, b))
    for _ in range(num_layers - 1):
        key, km, kv = jax.random.split(key, 3)
        gamma = jnp.ones((hidden_channels,), jnp.float32)
        beta = jnp.zeros((hidden_channels,), jnp.float32)
        running_mean = 0.1 * jax.random.normal(km, (hidden_channels,), jnp.float32)
        running_var = 1.0 + 0.1 * jax.random.uniform(kv, (hidden_channels,), jnp.float32)
        params["bns"].append((gamma, beta, running_mean, running_var))
    return params


if __name__ == "__main__":
    # Small, forward-consistent shapes.
    N = 8
    in_channels = 16
    hidden_channels = 32
    out_channels = 8
    num_layers = 3
    dropout = 0.5  # unused at inference (eval-mode no-op)

    key = jax.random.PRNGKey(0)
    key, kx = jax.random.split(key)
    x = jax.random.normal(kx, (N, in_channels), jnp.float32)

    params = init_mlp_params(key, in_channels, hidden_channels,
                             out_channels, num_layers)
    folded = fold_and_pad_params(params)

    log_probs, hidden = mlp_infer(folded, x)
    jax.block_until_ready((log_probs, hidden))

    assert log_probs.shape == (N, out_channels)
    assert log_probs.dtype == jnp.float32
    assert hidden.shape == (N, hidden_channels)
    # log_softmax rows must (approximately) exponentiate-sum to 1.
    assert jnp.allclose(jnp.sum(jnp.exp(log_probs), axis=-1), 1.0, atol=1e-4)

    ref_lp, ref_h = mlp_reference(folded, x)
    assert jnp.allclose(log_probs, ref_lp, atol=2e-3, rtol=2e-3)
    assert jnp.allclose(hidden.astype(jnp.float32), ref_h.astype(jnp.float32),
                        atol=2e-2, rtol=2e-2)

    print("KERNEL_OK")
</pallas_src>

<mosaic_0001>
module attributes {stable_mosaic.version = 11 : i64} {
  func.func @kernel(%arg0: i32, %arg1: memref<16x128xbf16, #tpu.memory_space<vmem>>, %arg2: memref<128x128xbf16, #tpu.memory_space<vmem>>, %arg3: memref<128x128xbf16, #tpu.memory_space<vmem>>, %arg4: memref<128x128xbf16, #tpu.memory_space<vmem>>, %arg5: memref<1x128xf32, #tpu.memory_space<vmem>>, %arg6: memref<1x128xf32, #tpu.memory_space<vmem>>, %arg7: memref<1x128xf32, #tpu.memory_space<vmem>>, %arg8: memref<16x8xf32, #tpu.memory_space<vmem>>, %arg9: memref<16x32xbf16, #tpu.memory_space<vmem>>) attributes {dimension_semantics = [#tpu.dimension_semantics<parallel>], iteration_bounds = array<i64: 1>, scalar_prefetch = 0 : i64, scratch_operands = 0 : i64, tpu.core_type = #tpu.core_type<tc>, window_params = [{transform_indices = @transform_0, window_bounds = array<i64: 16, 128>}, {pipeline_mode = #tpu.pipeline_mode<synchronous>, transform_indices = @transform_1, window_bounds = array<i64: 128, 128>}, {pipeline_mode = #tpu.pipeline_mode<synchronous>, transform_indices = @transform_2, window_bounds = array<i64: 128, 128>}, {pipeline_mode = #tpu.pipeline_mode<synchronous>, transform_indices = @transform_3, window_bounds = array<i64: 128, 128>}, {pipeline_mode = #tpu.pipeline_mode<synchronous>, transform_indices = @transform_4, window_bounds = array<i64: 1, 128>}, {pipeline_mode = #tpu.pipeline_mode<synchronous>, transform_indices = @transform_5, window_bounds = array<i64: 1, 128>}, {pipeline_mode = #tpu.pipeline_mode<synchronous>, transform_indices = @transform_6, window_bounds = array<i64: 1, 128>}, {transform_indices = @transform_7, window_bounds = array<i64: 16, 8>}, {transform_indices = @transform_8, window_bounds = array<i64: 16, 32>}]} {
    %c0 = arith.constant 0 : index
    %c0_0 = arith.constant 0 : index
    %0 = vector.load %arg1[%c0, %c0_0] : memref<16x128xbf16, #tpu.memory_space<vmem>>, vector<16x128xbf16>
    %c0_1 = arith.constant 0 : index
    %c0_2 = arith.constant 0 : index
    %1 = vector.load %arg2[%c0_1, %c0_2] : memref<128x128xbf16, #tpu.memory_space<vmem>>, vector<128x128xbf16>
    %cst = arith.constant dense<0.000000e+00> : vector<16x128xf32>
    %2 = tpu.matmul %0, %1, %cst {dimension_numbers = #tpu.dot_dimension_numbers<[1], [0], [0], [1], [0, 0, 1, 1], [], []>} : vector<16x128xbf16>, vector<128x128xbf16>, vector<16x128xf32> -> vector<16x128xf32>
    %c0_3 = arith.constant 0 : index
    %c0_4 = arith.constant 0 : index
    %3 = vector.load %arg5[%c0_3, %c0_4] : memref<1x128xf32, #tpu.memory_space<vmem>>, vector<1x128xf32>
    %4 = vector.broadcast %3 : vector<1x128xf32> to vector<16x128xf32>
    %5 = arith.addf %2, %4 : vector<16x128xf32>
    %cst_5 = arith.constant 0.000000e+00 : f32
    %6 = vector.broadcast %cst_5 : f32 to vector<16x128xf32>
    %7 = arith.maximumf %5, %6 : vector<16x128xf32>
    %8 = arith.truncf %7 : vector<16x128xf32> to vector<16x128xbf16>
    %c0_6 = arith.constant 0 : index
    %c0_7 = arith.constant 0 : index
    %9 = vector.load %arg3[%c0_6, %c0_7] : memref<128x128xbf16, #tpu.memory_space<vmem>>, vector<128x128xbf16>
    %cst_8 = arith.constant dense<0.000000e+00> : vector<16x128xf32>
    %10 = tpu.matmul %8, %9, %cst_8 {dimension_numbers = #tpu.dot_dimension_numbers<[1], [0], [0], [1], [0, 0, 1, 1], [], []>} : vector<16x128xbf16>, vector<128x128xbf16>, vector<16x128xf32> -> vector<16x128xf32>
    %c0_9 = arith.constant 0 : index
    %c0_10 = arith.constant 0 : index
    %11 = vector.load %arg6[%c0_9, %c0_10] : memref<1x128xf32, #tpu.memory_space<vmem>>, vector<1x128xf32>
    %12 = vector.broadcast %11 : vector<1x128xf32> to vector<16x128xf32>
    %13 = arith.addf %10, %12 : vector<16x128xf32>
    %cst_11 = arith.constant 0.000000e+00 : f32
    %14 = vector.broadcast %cst_11 : f32 to vector<16x128xf32>
    %15 = arith.maximumf %13, %14 : vector<16x128xf32>
    %16 = arith.truncf %15 : vector<16x128xf32> to vector<16x128xbf16>
    %17 = vector.extract_strided_slice %16 {offsets = [0, 0], sizes = [16, 32], strides = [1, 1]} : vector<16x128xbf16> to vector<16x32xbf16>
    %c0_12 = arith.constant 0 : index
    %c0_13 = arith.constant 0 : index
    %18 = vector.load %arg9[%c0_12, %c0_13] : memref<16x32xbf16, #tpu.memory_space<vmem>>, vector<16x32xbf16>
    tpu.vector_store %arg9[%c0_12, %c0_13], %17 {strides = array<i32>} : memref<16x32xbf16, #tpu.memory_space<vmem>>, vector<16x32xbf16>,
    %c0_14 = arith.constant 0 : index
    %c0_15 = arith.constant 0 : index
    %19 = vector.load %arg4[%c0_14, %c0_15] : memref<128x128xbf16, #tpu.memory_space<vmem>>, vector<128x128xbf16>
    %cst_16 = arith.constant dense<0.000000e+00> : vector<16x128xf32>
    %20 = tpu.matmul %16, %19, %cst_16 {dimension_numbers = #tpu.dot_dimension_numbers<[1], [0], [0], [1], [0, 0, 1, 1], [], []>} : vector<16x128xbf16>, vector<128x128xbf16>, vector<16x128xf32> -> vector<16x128xf32>
    %c0_17 = arith.constant 0 : index
    %c0_18 = arith.constant 0 : index
    %21 = vector.load %arg7[%c0_17, %c0_18] : memref<1x128xf32, #tpu.memory_space<vmem>>, vector<1x128xf32>
    %22 = vector.broadcast %21 : vector<1x128xf32> to vector<16x128xf32>
    %23 = arith.addf %20, %22 : vector<16x128xf32>
    %cst_19 = arith.constant dense<0xFF800000> : vector<16xf32>
    %24 = vector.multi_reduction <maximumf>, %23, %cst_19 [1] : vector<16x128xf32> to vector<16xf32>
    %25 = vector.shape_cast %24 : vector<16xf32> to vector<16x1xf32>
    %26 = vector.broadcast %25 : vector<16x1xf32> to vector<16x128xf32>
    %27 = arith.subf %23, %26 : vector<16x128xf32>
    %28 = math.exp %27 : vector<16x128xf32>
    %cst_20 = arith.constant dense<0.000000e+00> : vector<16xf32>
    %29 = vector.multi_reduction <add>, %28, %cst_20 [1] : vector<16x128xf32> to vector<16xf32>
    %30 = vector.shape_cast %29 : vector<16xf32> to vector<16x1xf32>
    %31 = math.log %30 : vector<16x1xf32>
    %32 = vector.broadcast %31 : vector<16x1xf32> to vector<16x128xf32>
    %33 = arith.subf %27, %32 : vector<16x128xf32>
    %34 = vector.extract_strided_slice %33 {offsets = [0, 0], sizes = [16, 8], strides = [1, 1]} : vector<16x128xf32> to vector<16x8xf32>
    %c0_21 = arith.constant 0 : index
    %c0_22 = arith.constant 0 : index
    %35 = vector.load %arg8[%c0_21, %c0_22] : memref<16x8xf32, #tpu.memory_space<vmem>>, vector<16x8xf32>
    tpu.vector_store %arg8[%c0_21, %c0_22], %34 {strides = array<i32>} : memref<16x8xf32, #tpu.memory_space<vmem>>, vector<16x8xf32>,
    return
  }
  func.func @transform_0(%arg0: i32) -> (i32, i32) {
    %c0_i32 = arith.constant 0 : i32
    %c0_i32_0 = arith.constant 0 : i32
    return %arg0, %c0_i32 : i32, i32
  }
  func.func @transform_1(%arg0: i32) -> (i32, i32) {
    %c0_i32 = arith.constant 0 : i32
    %c0_i32_0 = arith.constant 0 : i32
    %c0_i32_1 = arith.constant 0 : i32
    return %c0_i32, %c0_i32_0 : i32, i32
  }
  func.func @transform_2(%arg0: i32) -> (i32, i32) {
    %c0_i32 = arith.constant 0 : i32
    %c0_i32_0 = arith.constant 0 : i32
    %c0_i32_1 = arith.constant 0 : i32
    return %c0_i32, %c0_i32_0 : i32, i32
  }
  func.func @transform_3(%arg0: i32) -> (i32, i32) {
    %c0_i32 = arith.constant 0 : i32
    %c0_i32_0 = arith.constant 0 : i32
    %c0_i32_1 = arith.constant 0 : i32
    return %c0_i32, %c0_i32_0 : i32, i32
  }
  func.func @transform_4(%arg0: i32) -> (i32, i32) {
    %c0_i32 = arith.constant 0 : i32
    %c0_i32_0 = arith.constant 0 : i32
    %c0_i32_1 = arith.constant 0 : i32
    return %c0_i32, %c0_i32_0 : i32, i32
  }
  func.func @transform_5(%arg0: i32) -> (i32, i32) {
    %c0_i32 = arith.constant 0 : i32
    %c0_i32_0 = arith.constant 0 : i32
    %c0_i32_1 = arith.constant 0 : i32
    return %c0_i32, %c0_i32_0 : i32, i32
  }
  func.func @transform_6(%arg0: i32) -> (i32, i32) {
    %c0_i32 = arith.constant 0 : i32
    %c0_i32_0 = arith.constant 0 : i32
    %c0_i32_1 = arith.constant 0 : i32
    return %c0_i32, %c0_i32_0 : i32, i32
  }
  func.func @transform_7(%arg0: i32) -> (i32, i32) {
    %c0_i32 = arith.constant 0 : i32
    %c0_i32_0 = arith.constant 0 : i32
    return %arg0, %c0_i32 : i32, i32
  }
  func.func @transform_8(%arg0: i32) -> (i32, i32) {
    %c0_i32 = arith.constant 0 : i32
    %c0_i32_0 = arith.constant 0 : i32
    return %arg0, %c0_i32 : i32, i32
  }
}

module attributes {stable_mosaic.version = 11 : i64} {
  func.func @kernel(%arg0: i32, %arg1: memref<16x128xbf16, #tpu.memory_space<vmem>>, %arg2: memref<128x128xbf16, #tpu.memory_space<vmem>>, %arg3: memref<128x128xbf16, #tpu.memory_space<vmem>>, %arg4: memref<128x128xbf16, #tpu.memory_space<vmem>>, %arg5: memref<1x128xf32, #tpu.memory_space<vmem>>, %arg6: memref<1x128xf32, #tpu.memory_space<vmem>>, %arg7: memref<1x128xf32, #tpu.memory_space<vmem>>, %arg8: memref<16x8xf32, #tpu.memory_space<vmem>>, %arg9: memref<16x32xbf16, #tpu.memory_space<vmem>>) attributes {dimension_semantics = [#tpu.dimension_semantics<parallel>], iteration_bounds = array<i64: 1>, scalar_prefetch = 0 : i64, scratch_operands = 0 : i64, tpu.core_type = #tpu.core_type<tc>, window_params = [{transform_indices = @transform_0, window_bounds = array<i64: 16, 128>}, {pipeline_mode = #tpu.pipeline_mode<synchronous>, transform_indices = @transform_1, window_bounds = array<i64: 128, 128>}, {pipeline_mode = #tpu.pipeline_mode<synchronous>, transform_indices = @transform_2, window_bounds = array<i64: 128, 128>}, {pipeline_mode = #tpu.pipeline_mode<synchronous>, transform_indices = @transform_3, window_bounds = array<i64: 128, 128>}, {pipeline_mode = #tpu.pipeline_mode<synchronous>, transform_indices = @transform_4, window_bounds = array<i64: 1, 128>}, {pipeline_mode = #tpu.pipeline_mode<synchronous>, transform_indices = @transform_5, window_bounds = array<i64: 1, 128>}, {pipeline_mode = #tpu.pipeline_mode<synchronous>, transform_indices = @transform_6, window_bounds = array<i64: 1, 128>}, {transform_indices = @transform_7, window_bounds = array<i64: 16, 8>}, {transform_indices = @transform_8, window_bounds = array<i64: 16, 32>}]} {
    %c0 = arith.constant 0 : index
    %c0_0 = arith.constant 0 : index
    %0 = vector.load %arg1[%c0, %c0_0] : memref<16x128xbf16, #tpu.memory_space<vmem>>, vector<16x128xbf16>
    %c0_1 = arith.constant 0 : index
    %c0_2 = arith.constant 0 : index
    %1 = vector.load %arg2[%c0_1, %c0_2] : memref<128x128xbf16, #tpu.memory_space<vmem>>, vector<128x128xbf16>
    %cst = arith.constant dense<0.000000e+00> : vector<16x128xf32>
    %2 = tpu.matmul %0, %1, %cst {dimension_numbers = #tpu.dot_dimension_numbers<[1], [0], [0], [1], [0, 0, 1, 1], [], []>} : vector<16x128xbf16>, vector<128x128xbf16>, vector<16x128xf32> -> vector<16x128xf32>
    %c0_3 = arith.constant 0 : index
    %c0_4 = arith.constant 0 : index
    %3 = vector.load %arg5[%c0_3, %c0_4] : memref<1x128xf32, #tpu.memory_space<vmem>>, vector<1x128xf32>
    %4 = vector.broadcast %3 : vector<1x128xf32> to vector<16x128xf32>
    %5 = arith.addf %2, %4 : vector<16x128xf32>
    %cst_5 = arith.constant 0.000000e+00 : f32
    %6 = vector.broadcast %cst_5 : f32 to vector<16x128xf32>
    %7 = arith.maximumf %5, %6 : vector<16x128xf32>
    %8 = arith.truncf %7 : vector<16x128xf32> to vector<16x128xbf16>
    %c0_6 = arith.constant 0 : index
    %c0_7 = arith.constant 0 : index
    %9 = vector.load %arg3[%c0_6, %c0_7] : memref<128x128xbf16, #tpu.memory_space<vmem>>, vector<128x128xbf16>
    %cst_8 = arith.constant dense<0.000000e+00> : vector<16x128xf32>
    %10 = tpu.matmul %8, %9, %cst_8 {dimension_numbers = #tpu.dot_dimension_numbers<[1], [0], [0], [1], [0, 0, 1, 1], [], []>} : vector<16x128xbf16>, vector<128x128xbf16>, vector<16x128xf32> -> vector<16x128xf32>
    %c0_9 = arith.constant 0 : index
    %c0_10 = arith.constant 0 : index
    %11 = vector.load %arg6[%c0_9, %c0_10] : memref<1x128xf32, #tpu.memory_space<vmem>>, vector<1x128xf32>
    %12 = vector.broadcast %11 : vector<1x128xf32> to vector<16x128xf32>
    %13 = arith.addf %10, %12 : vector<16x128xf32>
    %cst_11 = arith.constant 0.000000e+00 : f32
    %14 = vector.broadcast %cst_11 : f32 to vector<16x128xf32>
    %15 = arith.maximumf %13, %14 : vector<16x128xf32>
    %16 = arith.truncf %15 : vector<16x128xf32> to vector<16x128xbf16>
    %17 = vector.extract_strided_slice %16 {offsets = [0, 0], sizes = [16, 32], strides = [1, 1]} : vector<16x128xbf16> to vector<16x32xbf16>
    %c0_12 = arith.constant 0 : index
    %c0_13 = arith.constant 0 : index
    %18 = vector.load %arg9[%c0_12, %c0_13] : memref<16x32xbf16, #tpu.memory_space<vmem>>, vector<16x32xbf16>
    tpu.vector_store %arg9[%c0_12, %c0_13], %17 {strides = array<i32>} : memref<16x32xbf16, #tpu.memory_space<vmem>>, vector<16x32xbf16>,
    %c0_14 = arith.constant 0 : index
    %c0_15 = arith.constant 0 : index
    %19 = vector.load %arg4[%c0_14, %c0_15] : memref<128x128xbf16, #tpu.memory_space<vmem>>, vector<128x128xbf16>
    %cst_16 = arith.constant dense<0.000000e+00> : vector<16x128xf32>
    %20 = tpu.matmul %16, %19, %cst_16 {dimension_numbers = #tpu.dot_dimension_numbers<[1], [0], [0], [1], [0, 0, 1, 1], [], []>} : vector<16x128xbf16>, vector<128x128xbf16>, vector<16x128xf32> -> vector<16x128xf32>
    %c0_17 = arith.constant 0 : index
    %c0_18 = arith.constant 0 : index
    %21 = vector.load %arg7[%c0_17, %c0_18] : memref<1x128xf32, #tpu.memory_space<vmem>>, vector<1x128xf32>
    %22 = vector.broadcast %21 : vector<1x128xf32> to vector<16x128xf32>
    %23 = arith.addf %20, %22 : vector<16x128xf32>
    %cst_19 = arith.constant dense<0xFF800000> : vector<16xf32>
    %24 = vector.multi_reduction <maximumf>, %23, %cst_19 [1] : vector<16x128xf32> to vector<16xf32>
    %25 = vector.shape_cast %24 : vector<16xf32> to vector<16x1xf32>
    %26 = vector.broadcast %25 : vector<16x1xf32> to vector<16x128xf32>
    %27 = arith.subf %23, %26 : vector<16x128xf32>
    %28 = math.exp %27 : vector<16x128xf32>
    %cst_20 = arith.constant dense<0.000000e+00> : vector<16xf32>
    %29 = vector.multi_reduction <add>, %28, %cst_20 [1] : vector<16x128xf32> to vector<16xf32>
    %30 = vector.shape_cast %29 : vector<16xf32> to vector<16x1xf32>
    %31 = math.log %30 : vector<16x1xf32>
    %32 = vector.broadcast %31 : vector<16x1xf32> to vector<16x128xf32>
    %33 = arith.subf %27, %32 : vector<16x128xf32>
    %34 = vector.extract_strided_slice %33 {offsets = [0, 0], sizes = [16, 8], strides = [1, 1]} : vector<16x128xf32> to vector<16x8xf32>
    %c0_21 = arith.constant 0 : index
    %c0_22 = arith.constant 0 : index
    %35 = vector.load %arg8[%c0_21, %c0_22] : memref<16x8xf32, #tpu.memory_space<vmem>>, vector<16x8xf32>
    tpu.vector_store %arg8[%c0_21, %c0_22], %34 {strides = array<i32>} : memref<16x8xf32, #tpu.memory_space<vmem>>, vector<16x8xf32>,
    return
  }
  func.func @transform_0(%arg0: i32) -> (i32, i32) {
    %c0_i32 = arith.constant 0 : i32
    %c0_i32_0 = arith.constant 0 : i32
    return %arg0, %c0_i32 : i32, i32
  }
  func.func @transform_1(%arg0: i32) -> (i32, i32) {
    %c0_i32 = arith.constant 0 : i32
    %c0_i32_0 = arith.constant 0 : i32
    %c0_i32_1 = arith.constant 0 : i32
    return %c0_i32, %c0_i32_0 : i32, i32
  }
  func.func @transform_2(%arg0: i32) -> (i32, i32) {
    %c0_i32 = arith.constant 0 : i32
    %c0_i32_0 = arith.constant 0 : i32
    %c0_i32_1 = arith.constant 0 : i32
    return %c0_i32, %c0_i32_0 : i32, i32
  }
  func.func @transform_3(%arg0: i32) -> (i32, i32) {
    %c0_i32 = arith.constant 0 : i32
    %c0_i32_0 = arith.constant 0 : i32
    %c0_i32_1 = arith.constant 0 : i32
    return %c0_i32, %c0_i32_0 : i32, i32
  }
  func.func @transform_4(%arg0: i32) -> (i32, i32) {
    %c0_i32 = arith.constant 0 : i32
    %c0_i32_0 = arith.constant 0 : i32
    %c0_i32_1 = arith.constant 0 : i32
    return %c0_i32, %c0_i32_0 : i32, i32
  }
  func.func @transform_5(%arg0: i32) -> (i32, i32) {
    %c0_i32 = arith.constant 0 : i32
    %c0_i32_0 = arith.constant 0 : i32
    %c0_i32_1 = arith.constant 0 : i32
    return %c0_i32, %c0_i32_0 : i32, i32
  }
  func.func @transform_6(%arg0: i32) -> (i32, i32) {
    %c0_i32 = arith.constant 0 : i32
    %c0_i32_0 = arith.constant 0 : i32
    %c0_i32_1 = arith.constant 0 : i32
    return %c0_i32, %c0_i32_0 : i32, i32
  }
  func.func @transform_7(%arg0: i32) -> (i32, i32) {
    %c0_i32 = arith.constant 0 : i32
    %c0_i32_0 = arith.constant 0 : i32
    return %arg0, %c0_i32 : i32, i32
  }
  func.func @transform_8(%arg0: i32) -> (i32, i32) {
    %c0_i32 = arith.constant 0 : i32
    %c0_i32_0 = arith.constant 0 : i32
    return %arg0, %c0_i32 : i32, i32
  }
}

</mosaic_0001>

<bundles_post_ra>
// kernel: tpu_custom_call.1
= control target key start
LH: loop header
LB: loop body
LE: loop exit
PB: predicated region body
PF: predicated region fallthrough
CT: control target
= control target key end

     0   :  { %14 = vsyncpa [#allocation3], 0  ;;  %s1008_s0 = inlined_call_operand.hbm [shape: bf16[8,128], index: 0, kind: input, shape index: {}]   ;;  %s1009_s1 = inlined_call_operand.hbm [shape: bf16[128,128], index: 1, kind: input, shape index: {}]   ;;  %s1010_s2 = inlined_call_operand.hbm [shape: bf16[128,128], index: 2, kind: input, shape index: {}]   ;;  %s1011_s3 = inlined_call_operand.hbm [shape: bf16[128,128], index: 3, kind: input, shape index: {}]   ;;  %s1012_s4 = inlined_call_operand.vmem [shape: f32[1,128], index: 4, kind: input, shape index: {}]   ;;  %s1013_s5 = inlined_call_operand.vmem [shape: f32[1,128], index: 5, kind: input, shape index: {}]   ;;  %s1014_s6 = inlined_call_operand.vmem [shape: f32[1,128], index: 6, kind: input, shape index: {}]   ;;  %s1015_s7 = inlined_call_operand.hbm [shape: f32[8,8], index: 7, kind: output, shape index: {0}]   ;;  %s1016_s8 = inlined_call_operand.hbm [shape: bf16[8,32], index: 8, kind: output, shape index: {1}]  }
   0x1   :  { %15 = vsyncpa [#allocation6], 0 }
   0x2   :  { %16 = vsyncpa [#allocation9], 0 }
   0x3   :  { %17 = vsyncpa [#allocation4], 0 }
   0x4   :  { %18 = vsyncpa [#allocation12], 0 }
   0x5   :  { %23 = vsyncadd [#allocation3], 64  ;;  %s810_s27 = smov [#allocation5]   ;;  %s811_s29 = smov [#allocation2]  }
   0x6   :  { %s36_s28 = sshll.u32 %s810_s27, 4  ;;  %s24_s30 = sshll.u32 %s811_s29, 4  ;;  %s37_s28 = int_to_ptr.vmem [resolvable:$true] %s36_s28  ;;  %s867_s30 = int_to_ptr.vmem [resolvable:$true] %s24_s30 }
   0x7   :  { %s668_s11 = scalar_lea.hbm %s1009_s1, 1024 }
   0x8   :  { %p669_p0 = scmp.ne.s32.totalorder %s1009_s1, %s668_s11  ;;  %p672_p1 = scmp.lt.u32.totalorder %s668_s11, %s1009_s1 }
   0xa   :  { %p674_p2 = pnand %p672_p1, %p669_p0 }
   0xc   :  { %677 = shalt.err (!%p674_p2)
}
   0xd   :  { %s678_s16 = scalar_lea.vmem %s37_s28, 1024  ;;  %p683_p4 = scmp.lt.s32.totalorder %s37_s28, %s37_s28 }
   0xe   :  { %p679_p3 = scmp.ne.s32.totalorder %s37_s28, %s678_s16  ;;  %p684_p5 = scmp.lt.s32.totalorder %s678_s16, %s678_s16 }
  0x10   :  { %p685_p6 = por %p684_p5, %p683_p4 }
  0x12   :  { %p686_p7 = pnand %p685_p6, %p679_p3 }
  0x14   :  { %689 = shalt.err (!%p686_p7)
}
  0x15   :  { %s812_s17 = smov 64   ;;  %s813_s18 = smov 4  }
  0x16   :  { %42 = dma.hbm_to_vmem [thread:$0]  %s1009_s1, 1024, %s37_s28, [#allocation6], %s812_s17, %s812_s17, %s813_s18  }
  0x17   :  { %s690_s23 = scalar_lea.hbm %s1008_s0, 64 }
  0x18   :  { %p691_p8 = scmp.ne.s32.totalorder %s1008_s0, %s690_s23  ;;  %p694_p9 = scmp.lt.u32.totalorder %s690_s23, %s1008_s0 }
  0x1a   :  { %p696_p10 = pnand %p694_p9, %p691_p8 }
  0x1c   :  { %699 = shalt.err (!%p696_p10)
}
  0x1d   :  { %s700_s29 = scalar_lea.vmem %s867_s30, 64  ;;  %s704_s1 = scalar_lea.vmem %s867_s30, 128 }
  0x1e   :  { %p701_p11 = scmp.ne.s32.totalorder %s867_s30, %s700_s29  ;;  %p705_p12 = scmp.lt.s32.totalorder %s867_s30, %s867_s30 }
  0x1f   :  { %p706_p13 = scmp.lt.s32.totalorder %s704_s1, %s700_s29 }
  0x21   :  { %p707_p0 = por %p706_p13, %p705_p12 }
  0x23   :  { %p708_p1 = pnand %p707_p0, %p701_p11 }
  0x25   :  { %711 = shalt.err (!%p708_p1)
}
  0x26   :  { %30 = dma.hbm_to_vmem [thread:$0]  %s1008_s0, 64, %s867_s30, [#allocation3], %s812_s17, %s812_s17, %s813_s18  }
  0x27   :  { %s814_s10 = smov [#allocation7]   ;;  %s815_s12 = smov [#allocation8]  }
  0x28   :  { %s48_s11 = sshll.u32 %s814_s10, 4  ;;  %s60_s13 = sshll.u32 %s815_s12, 4  ;;  %s49_s11 = int_to_ptr.vmem [resolvable:$true] %s48_s11  ;;  %s905_s13 = int_to_ptr.vmem [resolvable:$true] %s60_s13 }
  0x29   :  { %s712_s16 = scalar_lea.hbm %s1010_s2, 1024 }
  0x2a   :  { %p713_p2 = scmp.ne.s32.totalorder %s1010_s2, %s712_s16  ;;  %p716_p3 = scmp.lt.u32.totalorder %s712_s16, %s1010_s2 }
  0x2c   :  { %p718_p4 = pnand %p716_p3, %p713_p2 }
  0x2e   :  { %721 = shalt.err (!%p718_p4)
}
  0x2f   :  { %s722_s0 = scalar_lea.vmem %s49_s11, 1024  ;;  %p727_p6 = scmp.lt.s32.totalorder %s49_s11, %s49_s11 }
  0x30   :  { %p723_p5 = scmp.ne.s32.totalorder %s49_s11, %s722_s0  ;;  %p728_p7 = scmp.lt.s32.totalorder %s722_s0, %s722_s0 }
  0x32   :  { %p729_p8 = por %p728_p7, %p727_p6 }
  0x34   :  { %p730_p9 = pnand %p729_p8, %p723_p5 }
  0x36   :  { %733 = shalt.err (!%p730_p9)
}
  0x37   :  { %54 = dma.hbm_to_vmem [thread:$0]  %s1010_s2, 1024, %s49_s11, [#allocation6], %s812_s17, %s812_s17, %s813_s18  }
  0x38   :  { %s734_s26 = scalar_lea.hbm %s1011_s3, 1024 }
  0x39   :  { %p735_p10 = scmp.ne.s32.totalorder %s1011_s3, %s734_s26  ;;  %p738_p11 = scmp.lt.u32.totalorder %s734_s26, %s1011_s3 }
  0x3b   :  { %p740_p12 = pnand %p738_p11, %p735_p10 }
  0x3d   :  { %743 = shalt.err (!%p740_p12)
}
  0x3e   :  { %s744_s9 = scalar_lea.vmem %s905_s13, 1024  ;;  %p749_p0 = scmp.lt.s32.totalorder %s905_s13, %s905_s13 }
  0x3f   :  { %p745_p13 = scmp.ne.s32.totalorder %s905_s13, %s744_s9  ;;  %p750_p1 = scmp.lt.s32.totalorder %s744_s9, %s744_s9 }
  0x41   :  { %p751_p2 = por %p750_p1, %p749_p0 }
  0x43   :  { %p752_p3 = pnand %p751_p2, %p745_p13 }
  0x45   :  { %755 = shalt.err (!%p752_p3)
}
  0x46   :  { %66 = dma.hbm_to_vmem [thread:$0]  %s1011_s3, 1024, %s905_s13, [#allocation9], %s812_s17, %s812_s17, %s813_s18  }
  0x47   :  { %800 = dma.done.wait [#allocation3], 128  }
  0x48   :  { %801 = vsyncadd [#allocation3], 4294967168 }
  0x49   :  { %802 = dma.done.wait [#allocation6], 2048  }
  0x4a   :  { %803 = vsyncadd [#allocation6], 4294965248 }
  0x4b   :  { %804 = dma.done.wait [#allocation9], 1024  }
  0x4c   :  { %805 = vsyncadd [#allocation9], 4294966272  ;;  %v816_v0 = vmov 0.0   ;;  %vm817_vm0 = vmmov 0   ;;  %v635_v1 = vld [vmem:[#allocation5] sm:$0xff]   ;;  %v636_v2 = vld [vmem:[#allocation5 + $0x8] sm:$0xff]  }
  0x4d   :  { %563 = vmatprep.subr.bf16.mxu0 %v816_v0  ;;  %579 = vmatprep.mubr.msk.bf16.mxu0 %vm817_vm0, %v816_v0  ;;  %v637_v3 = vld [vmem:[#allocation5 + $0x10] sm:$0xff]   ;;  %v644_v4 = vld [vmem:[#allocation7] sm:$0xff]   ;;  %v638_v5 = vld [vmem:[#allocation5 + $0x18] sm:$0xff]   ;;  %vm331_vm1 = vcmask 257024   ;;  %vm466_vm2 = vcmask 64512  }
  0x4e   :  { %583 = vmatprep.subr.bf16.mxu1 %v816_v0  ;;  %599 = vmatprep.mubr.msk.bf16.mxu1 %vm817_vm0, %v816_v0  ;;  %v645_v6 = vld [vmem:[#allocation7 + $0x8] sm:$0xff]   ;;  %v639_v7 = vld [vmem:[#allocation5 + $0x20] sm:$0xff]   ;;  %v646_v8 = vld [vmem:[#allocation7 + $0x10] sm:$0xff]  }
  0x4f   :  { %564 = vmatpush3.bf16.msra.mxu0 %v635_v1  ;;  %584 = vmatpush3.bf16.msra.mxu1 %v644_v4  ;;  %v640_v9 = vld [vmem:[#allocation5 + $0x28] sm:$0xff]   ;;  %v647_v10 = vld [vmem:[#allocation7 + $0x18] sm:$0xff]   ;;  %v641_v11 = vld [vmem:[#allocation5 + $0x30] sm:$0xff]  }
  0x50   :  { %565 = vmatprep.subr.bf16.mxu0 %v816_v0  ;;  %585 = vmatprep.subr.bf16.mxu1 %v816_v0  ;;  %v648_v12 = vld [vmem:[#allocation7 + $0x20] sm:$0xff]   ;;  %v642_v13 = vld [vmem:[#allocation5 + $0x38] sm:$0xff]   ;;  %v649_v14 = vld [vmem:[#allocation7 + $0x28] sm:$0xff]  }
  0x51   :  { %v643_v15 = vld [vmem:[#allocation2] sm:$0xff]   ;;  %v650_v16 = vld [vmem:[#allocation7 + $0x30] sm:$0xff]   ;;  %v652_v18 = vld [vmem:[#allocation8] sm:$0xff]  }
  0x52   :  { %v651_v17 = vld [vmem:[#allocation7 + $0x38] sm:$0xff]   ;;  %v653_v19 = vld [vmem:[#allocation8 + $0x8] sm:$0xff]   ;;  %v654_v20 = vld [vmem:[#allocation8 + $0x10] sm:$0xff]  }
  0x53   :  { %566 = vmatpush3.bf16.msra.mxu0 %v636_v2  ;;  %586 = vmatpush3.bf16.msra.mxu1 %v645_v6  ;;  %v655_v21 = vld [vmem:[#allocation8 + $0x18] sm:$0xff]   ;;  %v656_v22 = vld [vmem:[#allocation8 + $0x20] sm:$0xff]   ;;  %v657_v23 = vld [vmem:[#allocation8 + $0x28] sm:$0xff]  }
  0x54   :  { %567 = vmatprep.subr.bf16.mxu0 %v816_v0  ;;  %587 = vmatprep.subr.bf16.mxu1 %v816_v0  ;;  %v504_v24 = vld [vmem:[%s1012_s4] ss:$0 sm:$0xff]  ;;  %v658_v34 = vld [vmem:[#allocation8 + $0x30] sm:$0xff]  }
  0x55   :  { %v659_v35 = vld [vmem:[#allocation8 + $0x38] sm:$0xff]  }
  0x56   :  { %v514_v36 = vld [vmem:[%s1013_s5] ss:$0 sm:$0xff] }
  0x57   :  { %568 = vmatpush3.bf16.msra.mxu0 %v637_v3  ;;  %588 = vmatpush3.bf16.msra.mxu1 %v646_v8  ;;  %v525_v48 = vld [vmem:[%s1014_s6] ss:$0 sm:$0xff] }
  0x58   :  { %569 = vmatprep.subr.bf16.mxu0 %v816_v0  ;;  %589 = vmatprep.subr.bf16.mxu1 %v816_v0 }
  0x5b   :  { %570 = vmatpush3.bf16.msra.mxu0 %v638_v5  ;;  %590 = vmatpush3.bf16.msra.mxu1 %v647_v10 }
  0x5c   :  { %571 = vmatprep.subr.bf16.mxu0 %v816_v0  ;;  %591 = vmatprep.subr.bf16.mxu1 %v816_v0 }
  0x5f   :  { %572 = vmatpush3.bf16.msra.mxu0 %v639_v7  ;;  %592 = vmatpush3.bf16.msra.mxu1 %v648_v12 }
  0x60   :  { %573 = vmatprep.subr.bf16.mxu0 %v816_v0  ;;  %593 = vmatprep.subr.bf16.mxu1 %v816_v0 }
  0x63   :  { %574 = vmatpush3.bf16.msra.mxu0 %v640_v9  ;;  %594 = vmatpush3.bf16.msra.mxu1 %v649_v14 }
  0x64   :  { %575 = vmatprep.subr.bf16.mxu0 %v816_v0  ;;  %595 = vmatprep.subr.bf16.mxu1 %v816_v0 }
  0x67   :  { %576 = vmatpush3.bf16.msra.mxu0 %v641_v11  ;;  %596 = vmatpush3.bf16.msra.mxu1 %v650_v16 }
  0x68   :  { %577 = vmatprep.subr.bf16.mxu0 %v816_v0  ;;  %597 = vmatprep.subr.bf16.mxu1 %v816_v0 }
  0x6b   :  { %578 = vmatpush3.bf16.msra.mxu0 %v642_v13  ;;  %598 = vmatpush3.bf16.msra.mxu1 %v651_v17 }
  0x6c   :  { %603 = vmatprep.subr.bf16.mxu0 %v816_v0 }
  0x6e   :  { %580 = vmatmul.mubr.bf16.vlgmr.msra.gmra.mrb[0].mxu0 %v643_v15 }
  0x6f   :  { %619 = vmatprep.mubr.msk.bf16.mxu0 %vm817_vm0, %v816_v0  ;;  %604 = vmatpush3.bf16.msra.mxu0 %v652_v18 }
  0x70   :  { %605 = vmatprep.subr.bf16.mxu0 %v816_v0 }
  0x73   :  { %606 = vmatpush3.bf16.msra.mxu0 %v653_v19 }
  0x74   :  { %607 = vmatprep.subr.bf16.mxu0 %v816_v0 }
  0x77   :  { %608 = vmatpush3.bf16.msra.mxu0 %v654_v20 }
  0x78   :  { %609 = vmatprep.subr.bf16.mxu0 %v816_v0 }
  0x7b   :  { %610 = vmatpush3.bf16.msra.mxu0 %v655_v21 }
  0x7c   :  { %611 = vmatprep.subr.bf16.mxu0 %v816_v0 }
  0x7f   :  { %612 = vmatpush3.bf16.msra.mxu0 %v656_v22 }
  0x80   :  { %613 = vmatprep.subr.bf16.mxu0 %v816_v0 }
  0x83   :  { %614 = vmatpush3.bf16.msra.mxu0 %v657_v23 }
  0x84   :  { %615 = vmatprep.subr.bf16.mxu0 %v816_v0 }
  0x87   :  { %616 = vmatpush3.bf16.msra.mxu0 %v658_v34 }
  0x88   :  { %617 = vmatprep.subr.bf16.mxu0 %v816_v0 }
  0x8b   :  { %618 = vmatpush3.bf16.msra.mxu0 %v659_v35 }
 0x141   :  { %v199_v25 = vpop.f32.mrb[0].mxu0 }
 0x142   :  { %v200_v26 = vadd.f32 %v504_v24, %v199_v25  ;;  %v581_v27 = vpop.f32.mrb[1].mxu0 }
 0x143   :  { %v202_v28 = vpop.f32.mrb[2].mxu0 }
 0x144   :  { %v203_v29 = vadd.f32 %v504_v24, %v202_v28  ;;  %v582_v30 = vpop.f32.mrb[3].mxu0  ;;  %v206_v31 = vmax.f32 %v200_v26, 0.0 }
 0x146   :  { %v207_v32 = vmax.f32 %v203_v29, 0.0 }
 0x148   :  { %v208_v33 = vpack.c.bf16 %v207_v32, %v206_v31 }
 0x14a   :  { %600 = vmatmul.mubr.bf16.vlgmr.msra.gmra.mrb[0].mxu1 %v208_v33 }
 0x21d   :  { %v314_v37 = vpop.f32.mrb[0].mxu1 }
 0x21e   :  { %v315_v38 = vadd.f32 %v514_v36, %v314_v37  ;;  %v601_v39 = vpop.f32.mrb[1].mxu1 }
 0x21f   :  { %v317_v40 = vpop.f32.mrb[2].mxu1 }
 0x220   :  { %v321_v41 = vmax.f32 %v315_v38, 0.0  ;;  %v318_v42 = vadd.f32 %v514_v36, %v317_v40  ;;  %v602_v43 = vpop.f32.mrb[3].mxu1 }
 0x222   :  { %v534_v44 = vpack.c.bf16 %v321_v41, %v321_v41  ;;  %v322_v45 = vmax.f32 %v318_v42, 0.0 }
 0x224   :  { %332 = vst.msk [vmem:[#allocation11] sm:$0xf] %vm331_vm1, %v534_v44  ;;  %v323_v46 = vpack.c.bf16 %v322_v45, %v321_v41  ;;  %v535_v47 = vpack.c.bf16 %v322_v45, %v322_v45 }
 0x226   :  { %333 = vst.msk [vmem:[#allocation11 + $0x4] sm:$0xf] %vm331_vm1, %v535_v47  ;;  %620 = vmatmul.mubr.bf16.vlgmr.msra.gmra.mrb[4].mxu0 %v323_v46 }
 0x2f9   :  { %v439_v49 = vpop.f32.mrb[4].mxu0 }
 0x2fa   :  { %v440_v50 = vadd.f32 %v525_v48, %v439_v49  ;;  %v621_v51 = vpop.f32.mrb[5].mxu0 }
 0x2fb   :  { %v442_v52 = vpop.f32.mrb[6].mxu0 }
 0x2fc   :  { %446 = vmax.xlane.f32.xlu0 %v440_v50  ;;  %v622_v53 = vpop.f32.mrb[7].mxu0  ;;  %v443_v54 = vadd.f32 %v525_v48, %v442_v52 }
 0x300   :  { %448 = vmax.xlane.f32.xlu0 %v443_v54 }
 0x389   :  { %v447_v55 = vpop.xlane.xlu0 %446 }
 0x38a   :  { %v450_v56 = vsub.f32 %v440_v50, %v447_v55 }
 0x38c   :  { %v452_v57 = vmul.f32 1.442695, %v450_v56 }
 0x38d   :  { %v449_v58 = vpop.xlane.xlu0 %448 }
 0x38e   :  { %v451_v59 = vsub.f32 %v443_v54, %v449_v58  ;;  %660 = vpow2.f32 %v452_v57 }
 0x390   :  { %v454_v60 = vmul.f32 1.442695, %v451_v59 }
 0x392   :  { %662 = vpow2.f32 %v454_v60 }
 0x398   :  { %v661_v61 = vpop.eup %660 }
 0x399   :  { %456 = vadd.xlane.f32.xlu1 %v661_v61 }
 0x39c   :  { %v663_v62 = vpop.eup %662 }
 0x39d   :  { %458 = vadd.xlane.f32.xlu1 %v663_v62 }
 0x426   :  { %v457_v63 = vpop.xlane.xlu1 %456 }
 0x427   :  { %664 = vlog2.f32 %v457_v63 }
 0x42a   :  { %v459_v0 = vpop.xlane.xlu1 %458 }
 0x42b   :  { %666 = vlog2.f32 %v459_v0 }
 0x431   :  { %v665_v1 = vpop.eup %664 }
 0x432   :  { %v461_v2 = vmul.f32 0.6931472, %v665_v1 }
 0x434   :  { %v464_v3 = vsub.f32 %v450_v56, %v461_v2 }
 0x435   :  { %v667_v4 = vpop.eup %666 }
 0x436   :  { %467 = vst.msk [vmem:[#allocation10] sm:$0xff] %vm466_vm2, %v464_v3  ;;  %v463_v5 = vmul.f32 0.6931472, %v667_v4 }
 0x438   :  { %v465_v6 = vsub.f32 %v451_v59, %v463_v5 }
 0x43a   :  { %468 = vst.msk [vmem:[#allocation10 + $0x8] sm:$0xff] %vm466_vm2, %v465_v6 }
 0x43b   :  { %473 = vsyncadd [#allocation4], 128  ;;  %s818_s5 = smov [#allocation10]  }
 0x43c   :  { %s474_s6 = sshll.u32 %s818_s5, 4  ;;  %s475_s6 = int_to_ptr.vmem [resolvable:$true] %s474_s6 }
 0x43d   :  { %s756_s15 = scalar_lea.vmem %s475_s6, 128  ;;  %s760_s16 = scalar_lea.vmem %s475_s6, 256 }
 0x43e   :  { %p757_p4 = scmp.ne.s32.totalorder %s475_s6, %s756_s15  ;;  %p761_p5 = scmp.lt.s32.totalorder %s475_s6, %s475_s6 }
 0x43f   :  { %p762_p6 = scmp.lt.s32.totalorder %s760_s16, %s756_s15 }
 0x441   :  { %p763_p7 = por %p762_p6, %p761_p5 }
 0x443   :  { %p764_p8 = pnand %p763_p7, %p757_p4 }
 0x445   :  { %767 = shalt.err (!%p764_p8)
}
 0x446   :  { %s768_s21 = scalar_lea.hbm %s1015_s7, 128 }
 0x447   :  { %p769_p9 = scmp.ne.s32.totalorder %s1015_s7, %s768_s21  ;;  %p772_p10 = scmp.lt.u32.totalorder %s768_s21, %s1015_s7 }
 0x449   :  { %p774_p11 = pnand %p772_p10, %p769_p9 }
 0x44b   :  { %777 = shalt.err (!%p774_p11)
}
 0x44c   :  { %s819_s24 = smov 128   ;;  %s820_s25 = smov 8  }
 0x44d   :  { %480 = dma.vmem_to_hbm [thread:$0]  %s475_s6, 128, %s1015_s7, [#allocation4], %s819_s24, %s819_s24, %s820_s25  }
 0x44e   :  { %485 = vsyncadd [#allocation12], 64  ;;  %s821_s29 = smov [#allocation11]  }
 0x44f   :  { %s486_s1 = sshll.u32 %s821_s29, 4  ;;  %s487_s1 = int_to_ptr.vmem [resolvable:$true] %s486_s1 }
 0x450   :  { %s778_s28 = scalar_lea.vmem %s487_s1, 64  ;;  %s782_s9 = scalar_lea.vmem %s487_s1, 128 }
 0x451   :  { %p779_p12 = scmp.ne.s32.totalorder %s487_s1, %s778_s28  ;;  %p783_p13 = scmp.lt.s32.totalorder %s487_s1, %s487_s1 }
 0x452   :  { %p784_p0 = scmp.lt.s32.totalorder %s782_s9, %s778_s28 }
 0x454   :  { %p785_p1 = por %p784_p0, %p783_p13 }
 0x456   :  { %p786_p2 = pnand %p785_p1, %p779_p12 }
 0x458   :  { %789 = shalt.err (!%p786_p2)
}
 0x459   :  { %s790_s3 = scalar_lea.hbm %s1016_s8, 64 }
 0x45a   :  { %p791_p3 = scmp.ne.s32.totalorder %s1016_s8, %s790_s3  ;;  %p794_p4 = scmp.lt.u32.totalorder %s790_s3, %s1016_s8 }
 0x45c   :  { %p796_p5 = pnand %p794_p4, %p791_p3 }
 0x45e   :  { %799 = shalt.err (!%p796_p5)
}
 0x45f   :  { %492 = dma.vmem_to_hbm [thread:$0]  %s487_s1, 64, %s1016_s8, [#allocation12], %s812_s17, %s812_s17, %s813_s18  }
 0x460   :  { %806 = dma.done.wait [#allocation4], 256  }
 0x461   :  { %807 = vsyncadd [#allocation4], 4294967040 }
 0x462   :  { %808 = dma.done.wait [#allocation12], 128  }
 0x463   :  { %809 = vsyncadd [#allocation12], 4294967168 }
 0x464   :  { %499 = vsyncpa [#allocation3], 1 }
 0x465   :  { %500 = vsyncpa [#allocation6], 1 }
 0x466   :  { %501 = vsyncpa [#allocation9], 1 }
 0x467   :  { %502 = vsyncpa [#allocation4], 1 }
 0x468   :  { %503 = vsyncpa [#allocation12], 1 }

// kernel: tpu_custom_call.1
= control target key start
LH: loop header
LB: loop body
LE: loop exit
PB: predicated region body
PF: predicated region fallthrough
CT: control target
= control target key end

     0   :  { %14 = vsyncpa [#allocation3], 0  ;;  %s1008_s0 = inlined_call_operand.hbm [shape: bf16[8,128], index: 0, kind: input, shape index: {}]   ;;  %s1009_s1 = inlined_call_operand.hbm [shape: bf16[128,128], index: 1, kind: input, shape index: {}]   ;;  %s1010_s2 = inlined_call_operand.hbm [shape: bf16[128,128], index: 2, kind: input, shape index: {}]   ;;  %s1011_s3 = inlined_call_operand.hbm [shape: bf16[128,128], index: 3, kind: input, shape index: {}]   ;;  %s1012_s4 = inlined_call_operand.vmem [shape: f32[1,128], index: 4, kind: input, shape index: {}]   ;;  %s1013_s5 = inlined_call_operand.vmem [shape: f32[1,128], index: 5, kind: input, shape index: {}]   ;;  %s1014_s6 = inlined_call_operand.vmem [shape: f32[1,128], index: 6, kind: input, shape index: {}]   ;;  %s1015_s7 = inlined_call_operand.hbm [shape: f32[8,8], index: 7, kind: output, shape index: {0}]   ;;  %s1016_s8 = inlined_call_operand.hbm [shape: bf16[8,32], index: 8, kind: output, shape index: {1}]  }
   0x1   :  { %15 = vsyncpa [#allocation6], 0 }
   0x2   :  { %16 = vsyncpa [#allocation9], 0 }
   0x3   :  { %17 = vsyncpa [#allocation4], 0 }
   0x4   :  { %18 = vsyncpa [#allocation12], 0 }
   0x5   :  { %23 = vsyncadd [#allocation3], 64  ;;  %s810_s27 = smov [#allocation5]   ;;  %s811_s29 = smov [#allocation2]  }
   0x6   :  { %s36_s28 = sshll.u32 %s810_s27, 4  ;;  %s24_s30 = sshll.u32 %s811_s29, 4  ;;  %s37_s28 = int_to_ptr.vmem [resolvable:$true] %s36_s28  ;;  %s867_s30 = int_to_ptr.vmem [resolvable:$true] %s24_s30 }
   0x7   :  { %s668_s11 = scalar_lea.hbm %s1009_s1, 1024 }
   0x8   :  { %p669_p0 = scmp.ne.s32.totalorder %s1009_s1, %s668_s11  ;;  %p672_p1 = scmp.lt.u32.totalorder %s668_s11, %s1009_s1 }
   0xa   :  { %p674_p2 = pnand %p672_p1, %p669_p0 }
   0xc   :  { %677 = shalt.err (!%p674_p2)
}
   0xd   :  { %s678_s16 = scalar_lea.vmem %s37_s28, 1024  ;;  %p683_p4 = scmp.lt.s32.totalorder %s37_s28, %s37_s28 }
   0xe   :  { %p679_p3 = scmp.ne.s32.totalorder %s37_s28, %s678_s16  ;;  %p684_p5 = scmp.lt.s32.totalorder %s678_s16, %s678_s16 }
  0x10   :  { %p685_p6 = por %p684_p5, %p683_p4 }
  0x12   :  { %p686_p7 = pnand %p685_p6, %p679_p3 }
  0x14   :  { %689 = shalt.err (!%p686_p7)
}
  0x15   :  { %s812_s17 = smov 64   ;;  %s813_s18 = smov 4  }
  0x16   :  { %42 = dma.hbm_to_vmem [thread:$0]  %s1009_s1, 1024, %s37_s28, [#allocation6], %s812_s17, %s812_s17, %s813_s18  }
  0x17   :  { %s690_s23 = scalar_lea.hbm %s1008_s0, 64 }
  0x18   :  { %p691_p8 = scmp.ne.s32.totalorder %s1008_s0, %s690_s23  ;;  %p694_p9 = scmp.lt.u32.totalorder %s690_s23, %s1008_s0 }
  0x1a   :  { %p696_p10 = pnand %p694_p9, %p691_p8 }
  0x1c   :  { %699 = shalt.err (!%p696_p10)
}
  0x1d   :  { %s700_s29 = scalar_lea.vmem %s867_s30, 64  ;;  %s704_s1 = scalar_lea.vmem %s867_s30, 128 }
  0x1e   :  { %p701_p11 = scmp.ne.s32.totalorder %s867_s30, %s700_s29  ;;  %p705_p12 = scmp.lt.s32.totalorder %s867_s30, %s867_s30 }
  0x1f   :  { %p706_p13 = scmp.lt.s32.totalorder %s704_s1, %s700_s29 }
  0x21   :  { %p707_p0 = por %p706_p13, %p705_p12 }
  0x23   :  { %p708_p1 = pnand %p707_p0, %p701_p11 }
  0x25   :  { %711 = shalt.err (!%p708_p1)
}
  0x26   :  { %30 = dma.hbm_to_vmem [thread:$0]  %s1008_s0, 64, %s867_s30, [#allocation3], %s812_s17, %s812_s17, %s813_s18  }
  0x27   :  { %s814_s10 = smov [#allocation7]   ;;  %s815_s12 = smov [#allocation8]  }
  0x28   :  { %s48_s11 = sshll.u32 %s814_s10, 4  ;;  %s60_s13 = sshll.u32 %s815_s12, 4  ;;  %s49_s11 = int_to_ptr.vmem [resolvable:$true] %s48_s11  ;;  %s905_s13 = int_to_ptr.vmem [resolvable:$true] %s60_s13 }
  0x29   :  { %s712_s16 = scalar_lea.hbm %s1010_s2, 1024 }
  0x2a   :  { %p713_p2 = scmp.ne.s32.totalorder %s1010_s2, %s712_s16  ;;  %p716_p3 = scmp.lt.u32.totalorder %s712_s16, %s1010_s2 }
  0x2c   :  { %p718_p4 = pnand %p716_p3, %p713_p2 }
  0x2e   :  { %721 = shalt.err (!%p718_p4)
}
  0x2f   :  { %s722_s0 = scalar_lea.vmem %s49_s11, 1024  ;;  %p727_p6 = scmp.lt.s32.totalorder %s49_s11, %s49_s11 }
  0x30   :  { %p723_p5 = scmp.ne.s32.totalorder %s49_s11, %s722_s0  ;;  %p728_p7 = scmp.lt.s32.totalorder %s722_s0, %s722_s0 }
  0x32   :  { %p729_p8 = por %p728_p7, %p727_p6 }
  0x34   :  { %p730_p9 = pnand %p729_p8, %p723_p5 }
  0x36   :  { %733 = shalt.err (!%p730_p9)
}
  0x37   :  { %54 = dma.hbm_to_vmem [thread:$0]  %s1010_s2, 1024, %s49_s11, [#allocation6], %s812_s17, %s812_s17, %s813_s18  }
  0x38   :  { %s734_s26 = scalar_lea.hbm %s1011_s3, 1024 }
  0x39   :  { %p735_p10 = scmp.ne.s32.totalorder %s1011_s3, %s734_s26  ;;  %p738_p11 = scmp.lt.u32.totalorder %s734_s26, %s1011_s3 }
  0x3b   :  { %p740_p12 = pnand %p738_p11, %p735_p10 }
  0x3d   :  { %743 = shalt.err (!%p740_p12)
}
  0x3e   :  { %s744_s9 = scalar_lea.vmem %s905_s13, 1024  ;;  %p749_p0 = scmp.lt.s32.totalorder %s905_s13, %s905_s13 }
  0x3f   :  { %p745_p13 = scmp.ne.s32.totalorder %s905_s13, %s744_s9  ;;  %p750_p1 = scmp.lt.s32.totalorder %s744_s9, %s744_s9 }
  0x41   :  { %p751_p2 = por %p750_p1, %p749_p0 }
  0x43   :  { %p752_p3 = pnand %p751_p2, %p745_p13 }
  0x45   :  { %755 = shalt.err (!%p752_p3)
}
  0x46   :  { %66 = dma.hbm_to_vmem [thread:$0]  %s1011_s3, 1024, %s905_s13, [#allocation9], %s812_s17, %s812_s17, %s813_s18  }
  0x47   :  { %800 = dma.done.wait [#allocation3], 128  }
  0x48   :  { %801 = vsyncadd [#allocation3], 4294967168 }
  0x49   :  { %802 = dma.done.wait [#allocation6], 2048  }
  0x4a   :  { %803 = vsyncadd [#allocation6], 4294965248 }
  0x4b   :  { %804 = dma.done.wait [#allocation9], 1024  }
  0x4c   :  { %805 = vsyncadd [#allocation9], 4294966272  ;;  %v816_v0 = vmov 0.0   ;;  %vm817_vm0 = vmmov 0   ;;  %v635_v1 = vld [vmem:[#allocation5] sm:$0xff]   ;;  %v636_v2 = vld [vmem:[#allocation5 + $0x8] sm:$0xff]  }
  0x4d   :  { %563 = vmatprep.subr.bf16.mxu0 %v816_v0  ;;  %579 = vmatprep.mubr.msk.bf16.mxu0 %vm817_vm0, %v816_v0  ;;  %v637_v3 = vld [vmem:[#allocation5 + $0x10] sm:$0xff]   ;;  %v644_v4 = vld [vmem:[#allocation7] sm:$0xff]   ;;  %v638_v5 = vld [vmem:[#allocation5 + $0x18] sm:$0xff]   ;;  %vm331_vm1 = vcmask 257024   ;;  %vm466_vm2 = vcmask 64512  }
  0x4e   :  { %583 = vmatprep.subr.bf16.mxu1 %v816_v0  ;;  %599 = vmatprep.mubr.msk.bf16.mxu1 %vm817_vm0, %v816_v0  ;;  %v645_v6 = vld [vmem:[#allocation7 + $0x8] sm:$0xff]   ;;  %v639_v7 = vld [vmem:[#allocation5 + $0x20] sm:$0xff]   ;;  %v646_v8 = vld [vmem:[#allocation7 + $0x10] sm:$0xff]  }
  0x4f   :  { %564 = vmatpush3.bf16.msra.mxu0 %v635_v1  ;;  %584 = vmatpush3.bf16.msra.mxu1 %v644_v4  ;;  %v640_v9 = vld [vmem:[#allocation5 + $0x28] sm:$0xff]   ;;  %v647_v10 = vld [vmem:[#allocation7 + $0x18] sm:$0xff]   ;;  %v641_v11 = vld [vmem:[#allocation5 + $0x30] sm:$0xff]  }
  0x50   :  { %565 = vmatprep.subr.bf16.mxu0 %v816_v0  ;;  %585 = vmatprep.subr.bf16.mxu1 %v816_v0  ;;  %v648_v12 = vld [vmem:[#allocation7 + $0x20] sm:$0xff]   ;;  %v642_v13 = vld [vmem:[#allocation5 + $0x38] sm:$0xff]   ;;  %v649_v14 = vld [vmem:[#allocation7 + $0x28] sm:$0xff]  }
  0x51   :  { %v643_v15 = vld [vmem:[#allocation2] sm:$0xff]   ;;  %v650_v16 = vld [vmem:[#allocation7 + $0x30] sm:$0xff]   ;;  %v652_v18 = vld [vmem:[#allocation8] sm:$0xff]  }
  0x52   :  { %v651_v17 = vld [vmem:[#allocation7 + $0x38] sm:$0xff]   ;;  %v653_v19 = vld [vmem:[#allocation8 + $0x8] sm:$0xff]   ;;  %v654_v20 = vld [vmem:[#allocation8 + $0x10] sm:$0xff]  }
  0x53   :  { %566 = vmatpush3.bf16.msra.mxu0 %v636_v2  ;;  %586 = vmatpush3.bf16.msra.mxu1 %v645_v6  ;;  %v655_v21 = vld [vmem:[#allocation8 + $0x18] sm:$0xff]   ;;  %v656_v22 = vld [vmem:[#allocation8 + $0x20] sm:$0xff]   ;;  %v657_v23 = vld [vmem:[#allocation8 + $0x28] sm:$0xff]  }
  0x54   :  { %567 = vmatprep.subr.bf16.mxu0 %v816_v0  ;;  %587 = vmatprep.subr.bf16.mxu1 %v816_v0  ;;  %v504_v24 = vld [vmem:[%s1012_s4] ss:$0 sm:$0xff]  ;;  %v658_v34 = vld [vmem:[#allocation8 + $0x30] sm:$0xff]  }
  0x55   :  { %v659_v35 = vld [vmem:[#allocation8 + $0x38] sm:$0xff]  }
  0x56   :  { %v514_v36 = vld [vmem:[%s1013_s5] ss:$0 sm:$0xff] }
  0x57   :  { %568 = vmatpush3.bf16.msra.mxu0 %v637_v3  ;;  %588 = vmatpush3.bf16.msra.mxu1 %v646_v8  ;;  %v525_v48 = vld [vmem:[%s1014_s6] ss:$0 sm:$0xff] }
  0x58   :  { %569 = vmatprep.subr.bf16.mxu0 %v816_v0  ;;  %589 = vmatprep.subr.bf16.mxu1 %v816_v0 }
  0x5b   :  { %570 = vmatpush3.bf16.msra.mxu0 %v638_v5  ;;  %590 = vmatpush3.bf16.msra.mxu1 %v647_v10 }
  0x5c   :  { %571 = vmatprep.subr.bf16.mxu0 %v816_v0  ;;  %591 = vmatprep.subr.bf16.mxu1 %v816_v0 }
  0x5f   :  { %572 = vmatpush3.bf16.msra.mxu0 %v639_v7  ;;  %592 = vmatpush3.bf16.msra.mxu1 %v648_v12 }
  0x60   :  { %573 = vmatprep.subr.bf16.mxu0 %v816_v0  ;;  %593 = vmatprep.subr.bf16.mxu1 %v816_v0 }
  0x63   :  { %574 = vmatpush3.bf16.msra.mxu0 %v640_v9  ;;  %594 = vmatpush3.bf16.msra.mxu1 %v649_v14 }
  0x64   :  { %575 = vmatprep.subr.bf16.mxu0 %v816_v0  ;;  %595 = vmatprep.subr.bf16.mxu1 %v816_v0 }
  0x67   :  { %576 = vmatpush3.bf16.msra.mxu0 %v641_v11  ;;  %596 = vmatpush3.bf16.msra.mxu1 %v650_v16 }
  0x68   :  { %577 = vmatprep.subr.bf16.mxu0 %v816_v0  ;;  %597 = vmatprep.subr.bf16.mxu1 %v816_v0 }
  0x6b   :  { %578 = vmatpush3.bf16.msra.mxu0 %v642_v13  ;;  %598 = vmatpush3.bf16.msra.mxu1 %v651_v17 }
  0x6c   :  { %603 = vmatprep.subr.bf16.mxu0 %v816_v0 }
  0x6e   :  { %580 = vmatmul.mubr.bf16.vlgmr.msra.gmra.mrb[0].mxu0 %v643_v15 }
  0x6f   :  { %619 = vmatprep.mubr.msk.bf16.mxu0 %vm817_vm0, %v816_v0  ;;  %604 = vmatpush3.bf16.msra.mxu0 %v652_v18 }
  0x70   :  { %605 = vmatprep.subr.bf16.mxu0 %v816_v0 }
  0x73   :  { %606 = vmatpush3.bf16.msra.mxu0 %v653_v19 }
  0x74   :  { %607 = vmatprep.subr.bf16.mxu0 %v816_v0 }
  0x77   :  { %608 = vmatpush3.bf16.msra.mxu0 %v654_v20 }
  0x78   :  { %609 = vmatprep.subr.bf16.mxu0 %v816_v0 }
  0x7b   :  { %610 = vmatpush3.bf16.msra.mxu0 %v655_v21 }
  0x7c   :  { %611 = vmatprep.subr.bf16.mxu0 %v816_v0 }
  0x7f   :  { %612 = vmatpush3.bf16.msra.mxu0 %v656_v22 }
  0x80   :  { %613 = vmatprep.subr.bf16.mxu0 %v816_v0 }
  0x83   :  { %614 = vmatpush3.bf16.msra.mxu0 %v657_v23 }
  0x84   :  { %615 = vmatprep.subr.bf16.mxu0 %v816_v0 }
  0x87   :  { %616 = vmatpush3.bf16.msra.mxu0 %v658_v34 }
  0x88   :  { %617 = vmatprep.subr.bf16.mxu0 %v816_v0 }
  0x8b   :  { %618 = vmatpush3.bf16.msra.mxu0 %v659_v35 }
 0x141   :  { %v199_v25 = vpop.f32.mrb[0].mxu0 }
 0x142   :  { %v200_v26 = vadd.f32 %v504_v24, %v199_v25  ;;  %v581_v27 = vpop.f32.mrb[1].mxu0 }
 0x143   :  { %v202_v28 = vpop.f32.mrb[2].mxu0 }
 0x144   :  { %v203_v29 = vadd.f32 %v504_v24, %v202_v28  ;;  %v582_v30 = vpop.f32.mrb[3].mxu0  ;;  %v206_v31 = vmax.f32 %v200_v26, 0.0 }
 0x146   :  { %v207_v32 = vmax.f32 %v203_v29, 0.0 }
 0x148   :  { %v208_v33 = vpack.c.bf16 %v207_v32, %v206_v31 }
 0x14a   :  { %600 = vmatmul.mubr.bf16.vlgmr.msra.gmra.mrb[0].mxu1 %v208_v33 }
 0x21d   :  { %v314_v37 = vpop.f32.mrb[0].mxu1 }
 0x21e   :  { %v315_v38 = vadd.f32 %v514_v36, %v314_v37  ;;  %v601_v39 = vpop.f32.mrb[1].mxu1 }
 0x21f   :  { %v317_v40 = vpop.f32.mrb[2].mxu1 }
 0x220   :  { %v321_v41 = vmax.f32 %v315_v38, 0.0  ;;  %v318_v42 = vadd.f32 %v514_v36, %v317_v40  ;;  %v602_v43 = vpop.f32.mrb[3].mxu1 }
 0x222   :  { %v534_v44 = vpack.c.bf16 %v321_v41, %v321_v41  ;;  %v322_v45 = vmax.f32 %v318_v42, 0.0 }
 0x224   :  { %332 = vst.msk [vmem:[#allocation11] sm:$0xf] %vm331_vm1, %v534_v44  ;;  %v323_v46 = vpack.c.bf16 %v322_v45, %v321_v41  ;;  %v535_v47 = vpack.c.bf16 %v322_v45, %v322_v45 }
 0x226   :  { %333 = vst.msk [vmem:[#allocation11 + $0x4] sm:$0xf] %vm331_vm1, %v535_v47  ;;  %620 = vmatmul.mubr.bf16.vlgmr.msra.gmra.mrb[4].mxu0 %v323_v46 }
 0x2f9   :  { %v439_v49 = vpop.f32.mrb[4].mxu0 }
 0x2fa   :  { %v440_v50 = vadd.f32 %v525_v48, %v439_v49  ;;  %v621_v51 = vpop.f32.mrb[5].mxu0 }
 0x2fb   :  { %v442_v52 = vpop.f32.mrb[6].mxu0 }
 0x2fc   :  { %446 = vmax.xlane.f32.xlu0 %v440_v50  ;;  %v622_v53 = vpop.f32.mrb[7].mxu0  ;;  %v443_v54 = vadd.f32 %v525_v48, %v442_v52 }
 0x300   :  { %448 = vmax.xlane.f32.xlu0 %v443_v54 }
 0x389   :  { %v447_v55 = vpop.xlane.xlu0 %446 }
 0x38a   :  { %v450_v56 = vsub.f32 %v440_v50, %v447_v55 }
 0x38c   :  { %v452_v57 = vmul.f32 1.442695, %v450_v56 }
 0x38d   :  { %v449_v58 = vpop.xlane.xlu0 %448 }
 0x38e   :  { %v451_v59 = vsub.f32 %v443_v54, %v449_v58  ;;  %660 = vpow2.f32 %v452_v57 }
 0x390   :  { %v454_v60 = vmul.f32 1.442695, %v451_v59 }
 0x392   :  { %662 = vpow2.f32 %v454_v60 }
 0x398   :  { %v661_v61 = vpop.eup %660 }
 0x399   :  { %456 = vadd.xlane.f32.xlu1 %v661_v61 }
 0x39c   :  { %v663_v62 = vpop.eup %662 }
 0x39d   :  { %458 = vadd.xlane.f32.xlu1 %v663_v62 }
 0x426   :  { %v457_v63 = vpop.xlane.xlu1 %456 }
 0x427   :  { %664 = vlog2.f32 %v457_v63 }
 0x42a   :  { %v459_v0 = vpop.xlane.xlu1 %458 }
 0x42b   :  { %666 = vlog2.f32 %v459_v0 }
 0x431   :  { %v665_v1 = vpop.eup %664 }
 0x432   :  { %v461_v2 = vmul.f32 0.6931472, %v665_v1 }
 0x434   :  { %v464_v3 = vsub.f32 %v450_v56, %v461_v2 }
 0x435   :  { %v667_v4 = vpop.eup %666 }
 0x436   :  { %467 = vst.msk [vmem:[#allocation10] sm:$0xff] %vm466_vm2, %v464_v3  ;;  %v463_v5 = vmul.f32 0.6931472, %v667_v4 }
 0x438   :  { %v465_v6 = vsub.f32 %v451_v59, %v463_v5 }
 0x43a   :  { %468 = vst.msk [vmem:[#allocation10 + $0x8] sm:$0xff] %vm466_vm2, %v465_v6 }
 0x43b   :  { %473 = vsyncadd [#allocation4], 128  ;;  %s818_s5 = smov [#allocation10]  }
 0x43c   :  { %s474_s6 = sshll.u32 %s818_s5, 4  ;;  %s475_s6 = int_to_ptr.vmem [resolvable:$true] %s474_s6 }
 0x43d   :  { %s756_s15 = scalar_lea.vmem %s475_s6, 128  ;;  %s760_s16 = scalar_lea.vmem %s475_s6, 256 }
 0x43e   :  { %p757_p4 = scmp.ne.s32.totalorder %s475_s6, %s756_s15  ;;  %p761_p5 = scmp.lt.s32.totalorder %s475_s6, %s475_s6 }
 0x43f   :  { %p762_p6 = scmp.lt.s32.totalorder %s760_s16, %s756_s15 }
 0x441   :  { %p763_p7 = por %p762_p6, %p761_p5 }
 0x443   :  { %p764_p8 = pnand %p763_p7, %p757_p4 }
 0x445   :  { %767 = shalt.err (!%p764_p8)
}
 0x446   :  { %s768_s21 = scalar_lea.hbm %s1015_s7, 128 }
 0x447   :  { %p769_p9 = scmp.ne.s32.totalorder %s1015_s7, %s768_s21  ;;  %p772_p10 = scmp.lt.u32.totalorder %s768_s21, %s1015_s7 }
 0x449   :  { %p774_p11 = pnand %p772_p10, %p769_p9 }
 0x44b   :  { %777 = shalt.err (!%p774_p11)
}
 0x44c   :  { %s819_s24 = smov 128   ;;  %s820_s25 = smov 8  }
 0x44d   :  { %480 = dma.vmem_to_hbm [thread:$0]  %s475_s6, 128, %s1015_s7, [#allocation4], %s819_s24, %s819_s24, %s820_s25  }
 0x44e   :  { %485 = vsyncadd [#allocation12], 64  ;;  %s821_s29 = smov [#allocation11]  }
 0x44f   :  { %s486_s1 = sshll.u32 %s821_s29, 4  ;;  %s487_s1 = int_to_ptr.vmem [resolvable:$true] %s486_s1 }
 0x450   :  { %s778_s28 = scalar_lea.vmem %s487_s1, 64  ;;  %s782_s9 = scalar_lea.vmem %s487_s1, 128 }
 0x451   :  { %p779_p12 = scmp.ne.s32.totalorder %s487_s1, %s778_s28  ;;  %p783_p13 = scmp.lt.s32.totalorder %s487_s1, %s487_s1 }
 0x452   :  { %p784_p0 = scmp.lt.s32.totalorder %s782_s9, %s778_s28 }
 0x454   :  { %p785_p1 = por %p784_p0, %p783_p13 }
 0x456   :  { %p786_p2 = pnand %p785_p1, %p779_p12 }
 0x458   :  { %789 = shalt.err (!%p786_p2)
}
 0x459   :  { %s790_s3 = scalar_lea.hbm %s1016_s8, 64 }
 0x45a   :  { %p791_p3 = scmp.ne.s32.totalorder %s1016_s8, %s790_s3  ;;  %p794_p4 = scmp.lt.u32.totalorder %s790_s3, %s1016_s8 }
 0x45c   :  { %p796_p5 = pnand %p794_p4, %p791_p3 }
 0x45e   :  { %799 = shalt.err (!%p796_p5)
}
 0x45f   :  { %492 = dma.vmem_to_hbm [thread:$0]  %s487_s1, 64, %s1016_s8, [#allocation12], %s812_s17, %s812_s17, %s813_s18  }
 0x460   :  { %806 = dma.done.wait [#allocation4], 256  }
 0x461   :  { %807 = vsyncadd [#allocation4], 4294967040 }
 0x462   :  { %808 = dma.done.wait [#allocation12], 128  }
 0x463   :  { %809 = vsyncadd [#allocation12], 4294967168 }
 0x464   :  { %499 = vsyncpa [#allocation3], 1 }
 0x465   :  { %500 = vsyncpa [#allocation6], 1 }
 0x466   :  { %501 = vsyncpa [#allocation9], 1 }
 0x467   :  { %502 = vsyncpa [#allocation4], 1 }
 0x468   :  { %503 = vsyncpa [#allocation12], 1 }

</bundles_post_ra>
